<compile_context>
chip_gen: v5e
topology: v5e:2x2
jax: 0.10.0
libtpu: 0.0.40
codegen_flags: <defaults>
</compile_context>

<pallas_src>
import jax
import jax.numpy as jnp
from jax.experimental import pallas as pl
from jax.experimental.pallas import tpu as pltpu


def _linear_kernel(x_ref, w_ref, b_ref, o_ref):
    # x_ref: (tb, D) VMEM   w_ref: (1, D) VMEM   b_ref: (1,) SMEM   o_ref: (1, tb) VMEM
    # 'od,bd->ob': contract the last (lane) dim of both operands; keeps both the
    # weight and the logits lane-dense.
    acc = jax.lax.dot_general(
        w_ref[...], x_ref[...],
        dimension_numbers=(((1,), (1,)), ((), ())),
        preferred_element_type=jnp.float32,
    )                                            # (1, tb) f32
    o_ref[...] = (acc + b_ref[0]).astype(o_ref.dtype)


def _round_up(x, m):
    return ((x + m - 1) // m) * m


def _choose_tiling(batch, input_dim):
    """Pick (rows per grid step, padded batch size)."""
    bytes_per_row = input_dim * 4                # f32
    # Keep the double-buffered x tile <= ~16 MiB total so the kernel fits
    # comfortably inside every generation's VMEM (incl. v7x's 64 MiB physical).
    budget_rows = max(8, (16 * 1024 * 1024) // (2 * bytes_per_row))
    if batch <= 1024 and batch <= budget_rows:
        tb = _round_up(batch, 8)                 # single grid step, block == array
        return tb, tb
    # Multi-step path: tile is a multiple of 128 so the (1, tb) output block is
    # lane-dense, and we keep >= 2 grid steps for megacore sharding on v7x.
    tb = min(budget_rows, _round_up(batch, 128) // 2, 8192)
    tb = max(128, (tb // 128) * 128)
    return tb, _round_up(batch, tb)


def logistic_regression_forward(x, weight, bias):
    """x: (B, D) f32; weight: (1, D) (PyTorch nn.Linear layout); bias: (1,) f32."""
    B, D = x.shape
    weight = weight.reshape(1, D)                # stays lane-dense
    bias = bias.reshape(1)

    tb, b_pad = _choose_tiling(B, D)
    if b_pad != B:
        x = jnp.pad(x, ((0, b_pad - B), (0, 0)))
    num_tiles = b_pad // tb

    out = pl.pallas_call(
        _linear_kernel,
        out_shape=jax.ShapeDtypeStruct((1, b_pad), x.dtype),
        grid_spec=pltpu.PrefetchScalarGridSpec(
            num_scalar_prefetch=0,
            grid=(num_tiles,),
            in_specs=[
                pl.BlockSpec((tb, D), lambda i: (i, 0)),               # x batch tile
                pl.BlockSpec((1, D), lambda i: (0, 0)),                # lane-dense weight
                pl.BlockSpec(memory_space=pltpu.MemorySpace.SMEM),     # bias scalar
            ],
            out_specs=pl.BlockSpec((1, tb), lambda i: (0, i)),         # lane-dense logits
        ),
        compiler_params=pltpu.CompilerParams(
            dimension_semantics=("parallel",),
            vmem_limit_bytes=32 * 1024 * 1024,
        ),
    )(x, weight, bias)

    return out[0, :B].reshape(B, 1)


if __name__ == "__main__":
    key = jax.random.PRNGKey(0)
    kx, kw, kb = jax.random.split(key, 3)

    # Small shapes consistent with nn.Linear(input_dim, 1)
    batch, input_dim = 16, 32
    weight = jax.random.normal(kw, (1, input_dim), dtype=jnp.float32) * 0.1   # (out=1, in)
    bias = jax.random.normal(kb, (1,), dtype=jnp.float32) * 0.1               # (out=1,)
    x = jax.random.normal(kx, (batch, input_dim), dtype=jnp.float32)

    logits = logistic_regression_forward(x, weight, bias)
    jax.block_until_ready(logits)

    ref = jnp.dot(x, weight.T, precision=jax.lax.Precision.HIGHEST) + bias
    assert logits.shape == (batch, 1)
    assert jnp.allclose(logits, ref, atol=1e-4, rtol=1e-4)

    # Exercise the multi-tile + padded (non-divisible batch) path as well.
    B2, D2 = 2300, 128
    x2 = jax.random.normal(jax.random.fold_in(kx, 1), (B2, D2), dtype=jnp.float32)
    w2 = jax.random.normal(jax.random.fold_in(kw, 1), (1, D2), dtype=jnp.float32) * 0.05
    b2 = jax.random.normal(jax.random.fold_in(kb, 1), (1,), dtype=jnp.float32) * 0.05
    logits2 = logistic_regression_forward(x2, w2, b2)
    jax.block_until_ready(logits2)
    ref2 = jnp.dot(x2, w2.T, precision=jax.lax.Precision.HIGHEST) + b2
    assert logits2.shape == (B2, 1)
    assert jnp.allclose(logits2, ref2, atol=1e-3, rtol=1e-3)

    print("KERNEL_OK")
</pallas_src>

<mosaic_0001>
module attributes {stable_mosaic.version = 11 : i64} {
  func.func @_linear_kernel(%arg0: i32, %arg1: memref<16x32xf32, #tpu.memory_space<vmem>>, %arg2: memref<1x32xf32, #tpu.memory_space<vmem>>, %arg3: memref<1xf32, #tpu.memory_space<smem>>, %arg4: memref<1x16xf32, #tpu.memory_space<vmem>>) attributes {dimension_semantics = [#tpu.dimension_semantics<parallel>], iteration_bounds = array<i64: 1>, scalar_prefetch = 0 : i64, scratch_operands = 0 : i64, tpu.core_type = #tpu.core_type<tc>, window_params = [{transform_indices = @transform_0, window_bounds = array<i64: 16, 32>}, {pipeline_mode = #tpu.pipeline_mode<synchronous>, transform_indices = @transform_1, window_bounds = array<i64: 1, 32>}, {transform_indices = @transform_2, window_bounds = array<i64: 1>}, {transform_indices = @transform_3, window_bounds = array<i64: 1, 16>}]} {
    %c0 = arith.constant 0 : index
    %c0_0 = arith.constant 0 : index
    %0 = vector.load %arg2[%c0, %c0_0] : memref<1x32xf32, #tpu.memory_space<vmem>>, vector<1x32xf32>
    %c0_1 = arith.constant 0 : index
    %c0_2 = arith.constant 0 : index
    %1 = vector.load %arg1[%c0_1, %c0_2] : memref<16x32xf32, #tpu.memory_space<vmem>>, vector<16x32xf32>
    %cst = arith.constant dense<0.000000e+00> : vector<1x16xf32>
    %2 = tpu.matmul %0, %1, %cst {dimension_numbers = #tpu.dot_dimension_numbers<[1], [1], [0], [0], [0, 0, 1, 0], [], []>} : vector<1x32xf32>, vector<16x32xf32>, vector<1x16xf32> -> vector<1x16xf32>
    %c0_3 = arith.constant 0 : index
    %3 = memref.load %arg3[%c0_3] : memref<1xf32, #tpu.memory_space<smem>>
    %4 = vector.broadcast %3 : f32 to vector<1x16xf32>
    %5 = arith.addf %2, %4 : vector<1x16xf32>
    %c0_4 = arith.constant 0 : index
    %c0_5 = arith.constant 0 : index
    %6 = vector.load %arg4[%c0_4, %c0_5] : memref<1x16xf32, #tpu.memory_space<vmem>>, vector<1x16xf32>
    tpu.vector_store %arg4[%c0_4, %c0_5], %5 {strides = array<i32>} : memref<1x16xf32, #tpu.memory_space<vmem>>, vector<1x16xf32>,
    return
  }
  func.func @transform_0(%arg0: i32) -> (i32, i32) {
    %c0_i32 = arith.constant 0 : i32
    %c0_i32_0 = arith.constant 0 : i32
    return %arg0, %c0_i32 : i32, i32
  }
  func.func @transform_1(%arg0: i32) -> (i32, i32) {
    %c0_i32 = arith.constant 0 : i32
    %c0_i32_0 = arith.constant 0 : i32
    %c0_i32_1 = arith.constant 0 : i32
    return %c0_i32, %c0_i32_0 : i32, i32
  }
  func.func @transform_2(%arg0: i32) -> i32 {
    %c0_i32 = arith.constant 0 : i32
    %c0_i32_0 = arith.constant 0 : i32
    return %c0_i32 : i32
  }
  func.func @transform_3(%arg0: i32) -> (i32, i32) {
    %c0_i32 = arith.constant 0 : i32
    %c0_i32_0 = arith.constant 0 : i32
    return %c0_i32, %arg0 : i32, i32
  }
}

</mosaic_0001>

<bundles_post_ra>
// kernel: tpu_custom_call.1
= control target key start
LH: loop header
LB: loop body
LE: loop exit
PB: predicated region body
PF: predicated region fallthrough
CT: control target
= control target key end

     0   :  { %9 = vsyncpa [#allocation4], 0  ;;  %s181_s0 = inlined_call_operand.hbm [shape: f32[16,32], index: 0, kind: input, shape index: {}]   ;;  %s182_s1 = inlined_call_operand.vmem [shape: f32[1,32], index: 1, kind: input, shape index: {}]   ;;  %s183_s2 = inlined_call_operand.<no memory space> [shape: f32[1], index: 2, kind: input, shape index: {}]   ;;  %s184_s3 = inlined_call_operand.hbm [shape: f32[1,16], index: 3, kind: output, shape index: {}]  }
   0x1   :  { %10 = vsyncpa [#allocation5], 0  ;;  %s15_s14 = sshll.u32 %s181_s0, 4  ;;  %s145_s15 = smov [#allocation3]   ;;  %s16_s14 = int_to_ptr.hbm [resolvable:$true] %s15_s14 }
   0x2   :  { %s17_s16 = sshll.u32 %s145_s15, 4  ;;  %s146_s17 = smov 128   ;;  %s18_s16 = int_to_ptr.vmem [resolvable:$true] %s17_s16 }
   0x3   :  { %s147_s18 = smov 8  }
   0x4   :  { %23 = dma.hbm_to_vmem [thread:$0]  %s16_s14, 256, %s18_s16, [#allocation4], %s146_s17, %s146_s17, %s147_s18  }
   0x5   :  { %141 = dma.done.wait [#allocation4], 256  }
   0x6   :  { %142 = vsyncadd [#allocation4], 4294967040  ;;  %vm37_vm0 = vcmask 261120   ;;  %v34_v0 = vld [vmem:[#allocation3 + $0x8] sm:$0xff]  ;;  %v33_v1 = vld [vmem:[#allocation3] sm:$0xff]  ;;  %v36_v3 = vstv %s183_s2  ;;  %s148_s22 = smov [#allocation6]  }
   0x7   :  { %86 = vmatpush.xpose.msk.msra.mxu0 %vm37_vm0, %v34_v0  ;;  %v32_v2 = vld [vmem:[%s182_s1] sm:$0x1]  ;;  %s74_s23 = sshll.u32 %s148_s22, 4  ;;  %s76_s26 = sshll.u32 %s184_s3, 4  ;;  %vm67_vm1 = vcmask 122880   ;;  %s75_s23 = int_to_ptr.vmem [resolvable:$true] %s74_s23  ;;  %s77_s26 = int_to_ptr.hbm [resolvable:$true] %s76_s26 }
   0xb   :  { %87 = vmatpush.xpose.msk.msra.mxu0 %vm37_vm0, %v33_v1 }
   0xe   :  { %88 = vmatmul.msk.f32.vlgmr.msra.gmra.mxu0 %vm37_vm0, %v32_v2 }
  0x8b   :  { %v64_v4 = vpop.f32.mrf.mxu0 }
  0x8c   :  { %v65_v5 = vadd.f32 %v64_v4, %v36_v3 }
  0x8e   :  { %68 = vst.msk [vmem:[#allocation6] sm:$0x1] %vm67_vm1, %v65_v5 }
  0x8f   :  { %79 = dma.vmem_to_hbm [thread:$0]  %s75_s23, 16, %s77_s26, [#allocation5]  }
  0x90   :  { %143 = dma.done.wait [#allocation5], 16  }
  0x91   :  { %144 = vsyncadd [#allocation5], 4294967280 }
  0x92   :  { %84 = vsyncpa [#allocation4], 1 }
  0x93   :  { %85 = vsyncpa [#allocation5], 1 }

</bundles_post_ra>
